<compile_context>
chip_gen: v7x
topology: tpu7x:2x2x1
jax: 0.10.0
libtpu: 0.0.40
codegen_flags: <defaults>
</compile_context>

<pallas_src>
import functools
import math

import jax
import jax.numpy as jnp
from jax import lax
from jax.experimental import pallas as pl
from jax.experimental.pallas import tpu as pltpu


def _pointwise(w, x):
    """1x1 conv: (Co, Ci) @ (Ci, L) -> (Co, L), f32 accumulation."""
    co, ci = w.shape
    if ci <= 32:
        # Tiny K: unrolled VPU broadcast-MACs (avoids <1%-utilization MXU shapes).
        out = jnp.zeros((co, x.shape[1]), jnp.float32)
        for c in range(ci):
            out = out + w[:, c:c + 1] * x[c:c + 1, :]
        return out
    return jnp.dot(w, x, preferred_element_type=jnp.float32)


def _mbv2_kernel(x_ref, w1_ref, b1_ref, wd_ref, bd_ref, w2_ref, b2_ref, o_ref,
                 *, H, W, Chid, use_res, expand):
    """One batch element per grid step.

    x_ref : (1, Cin, H*W)   input, NCHW with spatial flattened into lanes
    w1    : (Chid, Cin)     expand 1x1 weight (BN scale folded in)
    b1    : (Chid, 1)       expand bias (folded BN)
    wd    : (Chid, 9)       depthwise 3x3 taps, kh*3+kw order (BN scale folded)
    bd    : (Chid, 1)       depthwise bias (folded BN)
    w2    : (Cout, Chid)    reduce 1x1 weight (BN scale folded in)
    b2    : (Cout, 1)       reduce bias (folded BN, no activation)
    o_ref : (1, Cout, H*W)  output at stride-1 resolution (lane-dense store)
    """
    HW = H * W
    x = x_ref[0].astype(jnp.float32)                       # (Cin, HW)

    # ---- exp_1x1 : 1x1 conv -> +bias -> SiLU (skipped when expand_ratio == 1)
    if expand:
        h = _pointwise(w1_ref[...], x) + b1_ref[...]       # (Chid, HW)
        h = h * jax.nn.sigmoid(h)                          # SiLU
    else:
        h = x                                              # Chid == Cin

    # ---- conv_3x3 : depthwise 3x3, padding=1 (stride handled by wrapper)
    # Zero halo once along lanes; each tap is a static lane slice.
    P = W + 1                                              # covers |shift| <= W+1
    zpad = jnp.zeros((Chid, P), jnp.float32)
    hp = jnp.concatenate([zpad, h, zpad], axis=1)          # (Chid, HW + 2P)

    col = lax.broadcasted_iota(jnp.int32, (1, HW), 1) % W
    ok_l = col >= 1                                        # valid source for dw = -1
    ok_r = col <= W - 2                                    # valid source for dw = +1

    wd = wd_ref[...]                                       # (Chid, 9)
    acc = jnp.zeros((Chid, HW), jnp.float32)
    for kh in range(3):                                    # unrolled taps
        for kw in range(3):
            dh, dw = kh - 1, kw - 1
            start = P + dh * W + dw
            shifted = hp[:, start:start + HW]              # h[c, p + dh*W + dw]
            if dw == -1:
                shifted = jnp.where(ok_l, shifted, 0.0)
            elif dw == 1:
                shifted = jnp.where(ok_r, shifted, 0.0)
            tap = wd[:, kh * 3 + kw:kh * 3 + kw + 1]       # (Chid, 1)
            acc = acc + shifted * tap
    acc = acc + bd_ref[...]
    acc = acc * jax.nn.sigmoid(acc)                        # SiLU

    # ---- red_1x1 : 1x1 conv -> +bias (no activation)
    out = _pointwise(w2_ref[...], acc) + b2_ref[...]       # (Cout, HW)

    # ---- residual connection
    if use_res:
        out = out + x

    o_ref[0] = out.astype(o_ref.dtype)


def mobilenet_v2_block(x_nchw, params, *, stride, expand_ratio):
    """x_nchw: (N, Cin, H, W) — PyTorch-native layout."""
    assert stride in (1, 2)
    N, Cin, H, W = x_nchw.shape
    w1, s1, b1, wd, sd, bd, w2, s2, b2 = params
    Chid = wd.shape[-1]
    Cout = w2.shape[-1]
    use_res = (stride == 1 and Cin == Cout)
    expand = (expand_ratio != 1)
    HW = H * W

    # Fold BN scales into conv weights at trace time (review item); kernel only
    # applies per-channel bias after each conv.
    if expand:
        w1e = (w1 * s1).T.astype(jnp.float32)              # (Chid, Cin)
        b1c = b1.reshape(Chid, 1).astype(jnp.float32)
    else:                                                  # placeholders, unused
        w1e = jnp.zeros((1, 1), jnp.float32)
        b1c = jnp.zeros((1, 1), jnp.float32)
    wde = (wd * sd.reshape(1, 1, Chid)).reshape(9, Chid).T.astype(jnp.float32)
    bdc = bd.reshape(Chid, 1).astype(jnp.float32)
    w2e = (w2 * s2).T.astype(jnp.float32)                  # (Cout, Chid)
    b2c = b2.reshape(Cout, 1).astype(jnp.float32)

    x_flat = x_nchw.reshape(N, Cin, HW)                    # free: row-major NCHW

    kernel = functools.partial(_mbv2_kernel, H=H, W=W, Chid=Chid,
                               use_res=use_res, expand=expand)

    def const_spec(arr):
        shape = arr.shape
        # Constant block index -> DMA'd once for the whole grid.
        return pl.BlockSpec(shape, lambda *_: (0,) * len(shape))

    out_flat = pl.pallas_call(
        kernel,
        out_shape=jax.ShapeDtypeStruct((N, Cout, HW), x_nchw.dtype),
        grid_spec=pltpu.PrefetchScalarGridSpec(
            num_scalar_prefetch=0,
            grid=(N,),
            in_specs=[
                pl.BlockSpec((1, Cin, HW), lambda n: (n, 0, 0)),
                const_spec(w1e), const_spec(b1c),
                const_spec(wde), const_spec(bdc),
                const_spec(w2e), const_spec(b2c),
            ],
            out_specs=pl.BlockSpec((1, Cout, HW), lambda n: (n, 0, 0)),
        ),
        compiler_params=pltpu.CompilerParams(
            dimension_semantics=("parallel",),
            vmem_limit_bytes=32 * 1024 * 1024),
    )(x_flat, w1e, b1c, wde, bdc, w2e, b2c)

    out = out_flat.reshape(N, Cout, H, W)
    if stride == 2:
        # stride-2 depthwise == stride-1 depthwise subsampled; pointwise stages
        # commute with subsampling, so subsample the final full-res output.
        out = out[:, :, ::2, ::2]
    return out


def init_params(key, Cin, Cout, expand_ratio):
    """Deterministic synthetic parameters; BN given as (scale, bias) eval fold."""
    Chid = int(round(Cin * expand_ratio))
    ks = jax.random.split(key, 6)

    def bn_fold(k, C):
        k1, k2, k3, k4 = jax.random.split(k, 4)
        gamma = 1.0 + 0.1 * jax.random.normal(k1, (C,))
        beta = 0.1 * jax.random.normal(k2, (C,))
        mean = 0.1 * jax.random.normal(k3, (C,))
        var = jnp.abs(jax.random.normal(k4, (C,))) * 0.1 + 1.0
        scale = gamma / jnp.sqrt(var + 1e-5)
        bias = beta - mean * scale
        return (scale.reshape(1, C).astype(jnp.float32),
                bias.reshape(1, C).astype(jnp.float32))

    w1 = (jax.random.normal(ks[0], (Cin, Chid)) / math.sqrt(Cin)).astype(jnp.float32)
    s1, b1 = bn_fold(ks[1], Chid)
    wd = (jax.random.normal(ks[2], (3, 3, Chid)) / 3.0).astype(jnp.float32)
    sd, bd = bn_fold(ks[3], Chid)
    w2 = (jax.random.normal(ks[4], (Chid, Cout)) / math.sqrt(Chid)).astype(jnp.float32)
    s2, b2 = bn_fold(ks[5], Cout)
    return (w1, s1, b1, wd, sd, bd, w2, s2, b2)


def ref_forward(x, params, stride, expand_ratio):
    """Pure-JAX reference (NCHW) for correctness checking."""
    w1, s1, b1, wd, sd, bd, w2, s2, b2 = params
    N, Cin, H, W = x.shape
    Chid = wd.shape[-1]
    Cout = w2.shape[-1]
    h = x
    if expand_ratio != 1:
        h = jnp.einsum('nchw,cd->ndhw', x, w1)
        h = h * s1.reshape(1, Chid, 1, 1) + b1.reshape(1, Chid, 1, 1)
        h = h * jax.nn.sigmoid(h)
    wdep = jnp.transpose(wd, (2, 0, 1)).reshape(Chid, 1, 3, 3)
    h2 = lax.conv_general_dilated(
        h, wdep, window_strides=(stride, stride), padding=((1, 1), (1, 1)),
        dimension_numbers=('NCHW', 'OIHW', 'NCHW'),
        feature_group_count=Chid)
    h2 = h2 * sd.reshape(1, Chid, 1, 1) + bd.reshape(1, Chid, 1, 1)
    h2 = h2 * jax.nn.sigmoid(h2)
    out = jnp.einsum('nchw,cd->ndhw', h2, w2)
    out = out * s2.reshape(1, Cout, 1, 1) + b2.reshape(1, Cout, 1, 1)
    if stride == 1 and Cin == Cout:
        out = out + x
    return out


if __name__ == "__main__":
    key = jax.random.PRNGKey(0)
    kx, kp = jax.random.split(key)

    N, Cin, Cout, H, W = 2, 4, 4, 16, 16
    stride, expand_ratio = 1, 2          # hidden_dim = 8, residual is active

    x = jax.random.normal(kx, (N, Cin, H, W), dtype=jnp.float32)  # NCHW
    params = init_params(kp, Cin, Cout, expand_ratio)

    out = mobilenet_v2_block(x, params, stride=stride, expand_ratio=expand_ratio)
    out = jax.block_until_ready(out)

    ref = jax.block_until_ready(ref_forward(x, params, stride, expand_ratio))
    assert out.shape == ref.shape, (out.shape, ref.shape)
    assert jnp.allclose(out, ref, atol=1e-4, rtol=1e-4), "mismatch vs reference"

    print("KERNEL_OK")
</pallas_src>

<mosaic_0001>
module attributes {stable_mosaic.version = 11 : i64} {
  func.func @_mbv2_kernel(%arg0: i32, %arg1: memref<1x4x256xf32, #tpu.memory_space<vmem>>, %arg2: memref<8x4xf32, #tpu.memory_space<vmem>>, %arg3: memref<8x1xf32, #tpu.memory_space<vmem>>, %arg4: memref<8x9xf32, #tpu.memory_space<vmem>>, %arg5: memref<8x1xf32, #tpu.memory_space<vmem>>, %arg6: memref<4x8xf32, #tpu.memory_space<vmem>>, %arg7: memref<4x1xf32, #tpu.memory_space<vmem>>, %arg8: memref<1x4x256xf32, #tpu.memory_space<vmem>>) attributes {dimension_semantics = [#tpu.dimension_semantics<parallel>], iteration_bounds = array<i64: 2>, scalar_prefetch = 0 : i64, scratch_operands = 0 : i64, tpu.core_type = #tpu.core_type<tc>, window_params = [{transform_indices = @transform_0, window_bounds = array<i64: 1, 4, 256>}, {pipeline_mode = #tpu.pipeline_mode<synchronous>, transform_indices = @transform_1, window_bounds = array<i64: 8, 4>}, {pipeline_mode = #tpu.pipeline_mode<synchronous>, transform_indices = @transform_2, window_bounds = array<i64: 8, 1>}, {pipeline_mode = #tpu.pipeline_mode<synchronous>, transform_indices = @transform_3, window_bounds = array<i64: 8, 9>}, {pipeline_mode = #tpu.pipeline_mode<synchronous>, transform_indices = @transform_4, window_bounds = array<i64: 8, 1>}, {pipeline_mode = #tpu.pipeline_mode<synchronous>, transform_indices = @transform_5, window_bounds = array<i64: 4, 8>}, {pipeline_mode = #tpu.pipeline_mode<synchronous>, transform_indices = @transform_6, window_bounds = array<i64: 4, 1>}, {transform_indices = @transform_7, window_bounds = array<i64: 1, 4, 256>}]} {
    %c0 = arith.constant 0 : index
    %c0_0 = arith.constant 0 : index
    %c0_1 = arith.constant 0 : index
    %0 = vector.load %arg1[%c0, %c0_0, %c0_1] : memref<1x4x256xf32, #tpu.memory_space<vmem>>, vector<1x4x256xf32>
    %1 = vector.shape_cast %0 : vector<1x4x256xf32> to vector<4x256xf32>
    %c0_2 = arith.constant 0 : index
    %c0_3 = arith.constant 0 : index
    %2 = vector.load %arg2[%c0_2, %c0_3] : memref<8x4xf32, #tpu.memory_space<vmem>>, vector<8x4xf32>
    %cst = arith.constant 0.000000e+00 : f32
    %3 = vector.broadcast %cst : f32 to vector<8x256xf32>
    %4 = vector.extract_strided_slice %2 {offsets = [0, 0], sizes = [8, 1], strides = [1, 1]} : vector<8x4xf32> to vector<8x1xf32>
    %5 = vector.extract_strided_slice %1 {offsets = [0, 0], sizes = [1, 256], strides = [1, 1]} : vector<4x256xf32> to vector<1x256xf32>
    %6 = vector.broadcast %4 : vector<8x1xf32> to vector<8x256xf32>
    %7 = vector.broadcast %5 : vector<1x256xf32> to vector<8x256xf32>
    %8 = arith.mulf %6, %7 : vector<8x256xf32>
    %9 = arith.addf %3, %8 : vector<8x256xf32>
    %10 = vector.extract_strided_slice %2 {offsets = [0, 1], sizes = [8, 1], strides = [1, 1]} : vector<8x4xf32> to vector<8x1xf32>
    %11 = vector.extract_strided_slice %1 {offsets = [1, 0], sizes = [1, 256], strides = [1, 1]} : vector<4x256xf32> to vector<1x256xf32>
    %12 = vector.broadcast %10 : vector<8x1xf32> to vector<8x256xf32>
    %13 = vector.broadcast %11 : vector<1x256xf32> to vector<8x256xf32>
    %14 = arith.mulf %12, %13 : vector<8x256xf32>
    %15 = arith.addf %9, %14 : vector<8x256xf32>
    %16 = vector.extract_strided_slice %2 {offsets = [0, 2], sizes = [8, 1], strides = [1, 1]} : vector<8x4xf32> to vector<8x1xf32>
    %17 = vector.extract_strided_slice %1 {offsets = [2, 0], sizes = [1, 256], strides = [1, 1]} : vector<4x256xf32> to vector<1x256xf32>
    %18 = vector.broadcast %16 : vector<8x1xf32> to vector<8x256xf32>
    %19 = vector.broadcast %17 : vector<1x256xf32> to vector<8x256xf32>
    %20 = arith.mulf %18, %19 : vector<8x256xf32>
    %21 = arith.addf %15, %20 : vector<8x256xf32>
    %22 = vector.extract_strided_slice %2 {offsets = [0, 3], sizes = [8, 1], strides = [1, 1]} : vector<8x4xf32> to vector<8x1xf32>
    %23 = vector.extract_strided_slice %1 {offsets = [3, 0], sizes = [1, 256], strides = [1, 1]} : vector<4x256xf32> to vector<1x256xf32>
    %24 = vector.broadcast %22 : vector<8x1xf32> to vector<8x256xf32>
    %25 = vector.broadcast %23 : vector<1x256xf32> to vector<8x256xf32>
    %26 = arith.mulf %24, %25 : vector<8x256xf32>
    %27 = arith.addf %21, %26 : vector<8x256xf32>
    %c0_4 = arith.constant 0 : index
    %c0_5 = arith.constant 0 : index
    %28 = vector.load %arg3[%c0_4, %c0_5] : memref<8x1xf32, #tpu.memory_space<vmem>>, vector<8x1xf32>
    %29 = vector.broadcast %28 : vector<8x1xf32> to vector<8x256xf32>
    %30 = arith.addf %27, %29 : vector<8x256xf32>
    %31 = arith.negf %30 : vector<8x256xf32>
    %32 = math.exp %31 : vector<8x256xf32>
    %cst_6 = arith.constant 1.000000e+00 : f32
    %33 = vector.broadcast %cst_6 : f32 to vector<8x256xf32>
    %34 = arith.addf %33, %32 : vector<8x256xf32>
    %35 = arith.divf %33, %34 : vector<8x256xf32>
    %36 = arith.mulf %30, %35 : vector<8x256xf32>
    %cst_7 = arith.constant 0.000000e+00 : f32
    %37 = vector.broadcast %cst_7 : f32 to vector<8x17xf32>
    %38 = tpu.concatenate %37, %36, %37 in 1 : vector<8x17xf32>, vector<8x256xf32>, vector<8x17xf32> -> vector<8x290xf32>
    %39 = tpu.iota {dimensions = array<i32: 1>} : vector<1x256xi32>
    %c16_i32 = arith.constant 16 : i32
    %c0_i32 = arith.constant 0 : i32
    %40 = arith.cmpi eq, %c16_i32, %c0_i32 : i32
    %c1_i32 = arith.constant 1 : i32
    %41 = arith.select %40, %c1_i32, %c16_i32 : i32
    %42 = vector.broadcast %41 : i32 to vector<1x256xi32>
    %43 = arith.remsi %39, %42 : vector<1x256xi32>
    %c0_i32_8 = arith.constant 0 : i32
    %44 = vector.broadcast %c0_i32_8 : i32 to vector<1x256xi32>
    %45 = arith.cmpi ne, %43, %44 : vector<1x256xi32>
    %c0_i32_9 = arith.constant 0 : i32
    %46 = vector.broadcast %c0_i32_9 : i32 to vector<1x256xi32>
    %47 = arith.cmpi slt, %43, %46 : vector<1x256xi32>
    %c0_i32_10 = arith.constant 0 : i32
    %48 = arith.cmpi slt, %41, %c0_i32_10 : i32
    %49 = vector.broadcast %48 : i1 to vector<1x256xi1>
    %50 = vector.broadcast %49 : vector<1x256xi1> to vector<1x256xi1>
    %51 = arith.xori %47, %50 : vector<1x256xi1>
    %52 = arith.andi %51, %45 : vector<1x256xi1>
    %53 = vector.broadcast %41 : i32 to vector<1x256xi32>
    %54 = arith.addi %43, %53 : vector<1x256xi32>
    %55 = arith.select %52, %54, %43 : vector<1x256xi1>, vector<1x256xi32>
    %c1_i32_11 = arith.constant 1 : i32
    %56 = vector.broadcast %c1_i32_11 : i32 to vector<1x256xi32>
    %57 = arith.cmpi sge, %55, %56 : vector<1x256xi32>
    %c14_i32 = arith.constant 14 : i32
    %58 = vector.broadcast %c14_i32 : i32 to vector<1x256xi32>
    %59 = arith.cmpi sle, %55, %58 : vector<1x256xi32>
    %c0_12 = arith.constant 0 : index
    %c0_13 = arith.constant 0 : index
    %60 = vector.load %arg4[%c0_12, %c0_13] : memref<8x9xf32, #tpu.memory_space<vmem>>, vector<8x9xf32>
    %cst_14 = arith.constant 0.000000e+00 : f32
    %61 = vector.broadcast %cst_14 : f32 to vector<8x256xf32>
    %62 = vector.extract_strided_slice %38 {offsets = [0, 0], sizes = [8, 256], strides = [1, 1]} : vector<8x290xf32> to vector<8x256xf32>
    %cst_15 = arith.constant 0.000000e+00 : f32
    %63 = vector.shape_cast %57 : vector<1x256xi1> to vector<1x256xi1>
    %64 = vector.broadcast %63 : vector<1x256xi1> to vector<8x256xi1>
    %65 = vector.broadcast %cst_15 : f32 to vector<8x256xf32>
    %66 = arith.select %64, %62, %65 : vector<8x256xi1>, vector<8x256xf32>
    %67 = vector.extract_strided_slice %60 {offsets = [0, 0], sizes = [8, 1], strides = [1, 1]} : vector<8x9xf32> to vector<8x1xf32>
    %68 = vector.broadcast %67 : vector<8x1xf32> to vector<8x256xf32>
    %69 = arith.mulf %66, %68 : vector<8x256xf32>
    %70 = arith.addf %61, %69 : vector<8x256xf32>
    %71 = vector.extract_strided_slice %38 {offsets = [0, 1], sizes = [8, 256], strides = [1, 1]} : vector<8x290xf32> to vector<8x256xf32>
    %72 = vector.extract_strided_slice %60 {offsets = [0, 1], sizes = [8, 1], strides = [1, 1]} : vector<8x9xf32> to vector<8x1xf32>
    %73 = vector.broadcast %72 : vector<8x1xf32> to vector<8x256xf32>
    %74 = arith.mulf %71, %73 : vector<8x256xf32>
    %75 = arith.addf %70, %74 : vector<8x256xf32>
    %76 = vector.extract_strided_slice %38 {offsets = [0, 2], sizes = [8, 256], strides = [1, 1]} : vector<8x290xf32> to vector<8x256xf32>
    %cst_16 = arith.constant 0.000000e+00 : f32
    %77 = vector.shape_cast %59 : vector<1x256xi1> to vector<1x256xi1>
    %78 = vector.broadcast %77 : vector<1x256xi1> to vector<8x256xi1>
    %79 = vector.broadcast %cst_16 : f32 to vector<8x256xf32>
    %80 = arith.select %78, %76, %79 : vector<8x256xi1>, vector<8x256xf32>
    %81 = vector.extract_strided_slice %60 {offsets = [0, 2], sizes = [8, 1], strides = [1, 1]} : vector<8x9xf32> to vector<8x1xf32>
    %82 = vector.broadcast %81 : vector<8x1xf32> to vector<8x256xf32>
    %83 = arith.mulf %80, %82 : vector<8x256xf32>
    %84 = arith.addf %75, %83 : vector<8x256xf32>
    %85 = vector.extract_strided_slice %38 {offsets = [0, 16], sizes = [8, 256], strides = [1, 1]} : vector<8x290xf32> to vector<8x256xf32>
    %cst_17 = arith.constant 0.000000e+00 : f32
    %86 = vector.shape_cast %57 : vector<1x256xi1> to vector<1x256xi1>
    %87 = vector.broadcast %86 : vector<1x256xi1> to vector<8x256xi1>
    %88 = vector.broadcast %cst_17 : f32 to vector<8x256xf32>
    %89 = arith.select %87, %85, %88 : vector<8x256xi1>, vector<8x256xf32>
    %90 = vector.extract_strided_slice %60 {offsets = [0, 3], sizes = [8, 1], strides = [1, 1]} : vector<8x9xf32> to vector<8x1xf32>
    %91 = vector.broadcast %90 : vector<8x1xf32> to vector<8x256xf32>
    %92 = arith.mulf %89, %91 : vector<8x256xf32>
    %93 = arith.addf %84, %92 : vector<8x256xf32>
    %94 = vector.extract_strided_slice %38 {offsets = [0, 17], sizes = [8, 256], strides = [1, 1]} : vector<8x290xf32> to vector<8x256xf32>
    %95 = vector.extract_strided_slice %60 {offsets = [0, 4], sizes = [8, 1], strides = [1, 1]} : vector<8x9xf32> to vector<8x1xf32>
    %96 = vector.broadcast %95 : vector<8x1xf32> to vector<8x256xf32>
    %97 = arith.mulf %94, %96 : vector<8x256xf32>
    %98 = arith.addf %93, %97 : vector<8x256xf32>
    %99 = vector.extract_strided_slice %38 {offsets = [0, 18], sizes = [8, 256], strides = [1, 1]} : vector<8x290xf32> to vector<8x256xf32>
    %cst_18 = arith.constant 0.000000e+00 : f32
    %100 = vector.shape_cast %59 : vector<1x256xi1> to vector<1x256xi1>
    %101 = vector.broadcast %100 : vector<1x256xi1> to vector<8x256xi1>
    %102 = vector.broadcast %cst_18 : f32 to vector<8x256xf32>
    %103 = arith.select %101, %99, %102 : vector<8x256xi1>, vector<8x256xf32>
    %104 = vector.extract_strided_slice %60 {offsets = [0, 5], sizes = [8, 1], strides = [1, 1]} : vector<8x9xf32> to vector<8x1xf32>
    %105 = vector.broadcast %104 : vector<8x1xf32> to vector<8x256xf32>
    %106 = arith.mulf %103, %105 : vector<8x256xf32>
    %107 = arith.addf %98, %106 : vector<8x256xf32>
    %108 = vector.extract_strided_slice %38 {offsets = [0, 32], sizes = [8, 256], strides = [1, 1]} : vector<8x290xf32> to vector<8x256xf32>
    %cst_19 = arith.constant 0.000000e+00 : f32
    %109 = vector.shape_cast %57 : vector<1x256xi1> to vector<1x256xi1>
    %110 = vector.broadcast %109 : vector<1x256xi1> to vector<8x256xi1>
    %111 = vector.broadcast %cst_19 : f32 to vector<8x256xf32>
    %112 = arith.select %110, %108, %111 : vector<8x256xi1>, vector<8x256xf32>
    %113 = vector.extract_strided_slice %60 {offsets = [0, 6], sizes = [8, 1], strides = [1, 1]} : vector<8x9xf32> to vector<8x1xf32>
    %114 = vector.broadcast %113 : vector<8x1xf32> to vector<8x256xf32>
    %115 = arith.mulf %112, %114 : vector<8x256xf32>
    %116 = arith.addf %107, %115 : vector<8x256xf32>
    %117 = vector.extract_strided_slice %38 {offsets = [0, 33], sizes = [8, 256], strides = [1, 1]} : vector<8x290xf32> to vector<8x256xf32>
    %118 = vector.extract_strided_slice %60 {offsets = [0, 7], sizes = [8, 1], strides = [1, 1]} : vector<8x9xf32> to vector<8x1xf32>
    %119 = vector.broadcast %118 : vector<8x1xf32> to vector<8x256xf32>
    %120 = arith.mulf %117, %119 : vector<8x256xf32>
    %121 = arith.addf %116, %120 : vector<8x256xf32>
    %122 = vector.extract_strided_slice %38 {offsets = [0, 34], sizes = [8, 256], strides = [1, 1]} : vector<8x290xf32> to vector<8x256xf32>
    %cst_20 = arith.constant 0.000000e+00 : f32
    %123 = vector.shape_cast %59 : vector<1x256xi1> to vector<1x256xi1>
    %124 = vector.broadcast %123 : vector<1x256xi1> to vector<8x256xi1>
    %125 = vector.broadcast %cst_20 : f32 to vector<8x256xf32>
    %126 = arith.select %124, %122, %125 : vector<8x256xi1>, vector<8x256xf32>
    %127 = vector.extract_strided_slice %60 {offsets = [0, 8], sizes = [8, 1], strides = [1, 1]} : vector<8x9xf32> to vector<8x1xf32>
    %128 = vector.broadcast %127 : vector<8x1xf32> to vector<8x256xf32>
    %129 = arith.mulf %126, %128 : vector<8x256xf32>
    %130 = arith.addf %121, %129 : vector<8x256xf32>
    %c0_21 = arith.constant 0 : index
    %c0_22 = arith.constant 0 : index
    %131 = vector.load %arg5[%c0_21, %c0_22] : memref<8x1xf32, #tpu.memory_space<vmem>>, vector<8x1xf32>
    %132 = vector.broadcast %131 : vector<8x1xf32> to vector<8x256xf32>
    %133 = arith.addf %130, %132 : vector<8x256xf32>
    %134 = arith.negf %133 : vector<8x256xf32>
    %135 = math.exp %134 : vector<8x256xf32>
    %cst_23 = arith.constant 1.000000e+00 : f32
    %136 = vector.broadcast %cst_23 : f32 to vector<8x256xf32>
    %137 = arith.addf %136, %135 : vector<8x256xf32>
    %138 = arith.divf %136, %137 : vector<8x256xf32>
    %139 = arith.mulf %133, %138 : vector<8x256xf32>
    %c0_24 = arith.constant 0 : index
    %c0_25 = arith.constant 0 : index
    %140 = vector.load %arg6[%c0_24, %c0_25] : memref<4x8xf32, #tpu.memory_space<vmem>>, vector<4x8xf32>
    %cst_26 = arith.constant 0.000000e+00 : f32
    %141 = vector.broadcast %cst_26 : f32 to vector<4x256xf32>
    %142 = vector.extract_strided_slice %140 {offsets = [0, 0], sizes = [4, 1], strides = [1, 1]} : vector<4x8xf32> to vector<4x1xf32>
    %143 = vector.extract_strided_slice %139 {offsets = [0, 0], sizes = [1, 256], strides = [1, 1]} : vector<8x256xf32> to vector<1x256xf32>
    %144 = vector.broadcast %142 : vector<4x1xf32> to vector<4x256xf32>
    %145 = vector.broadcast %143 : vector<1x256xf32> to vector<4x256xf32>
    %146 = arith.mulf %144, %145 : vector<4x256xf32>
    %147 = arith.addf %141, %146 : vector<4x256xf32>
    %148 = vector.extract_strided_slice %140 {offsets = [0, 1], sizes = [4, 1], strides = [1, 1]} : vector<4x8xf32> to vector<4x1xf32>
    %149 = vector.extract_strided_slice %139 {offsets = [1, 0], sizes = [1, 256], strides = [1, 1]} : vector<8x256xf32> to vector<1x256xf32>
    %150 = vector.broadcast %148 : vector<4x1xf32> to vector<4x256xf32>
    %151 = vector.broadcast %149 : vector<1x256xf32> to vector<4x256xf32>
    %152 = arith.mulf %150, %151 : vector<4x256xf32>
    %153 = arith.addf %147, %152 : vector<4x256xf32>
    %154 = vector.extract_strided_slice %140 {offsets = [0, 2], sizes = [4, 1], strides = [1, 1]} : vector<4x8xf32> to vector<4x1xf32>
    %155 = vector.extract_strided_slice %139 {offsets = [2, 0], sizes = [1, 256], strides = [1, 1]} : vector<8x256xf32> to vector<1x256xf32>
    %156 = vector.broadcast %154 : vector<4x1xf32> to vector<4x256xf32>
    %157 = vector.broadcast %155 : vector<1x256xf32> to vector<4x256xf32>
    %158 = arith.mulf %156, %157 : vector<4x256xf32>
    %159 = arith.addf %153, %158 : vector<4x256xf32>
    %160 = vector.extract_strided_slice %140 {offsets = [0, 3], sizes = [4, 1], strides = [1, 1]} : vector<4x8xf32> to vector<4x1xf32>
    %161 = vector.extract_strided_slice %139 {offsets = [3, 0], sizes = [1, 256], strides = [1, 1]} : vector<8x256xf32> to vector<1x256xf32>
    %162 = vector.broadcast %160 : vector<4x1xf32> to vector<4x256xf32>
    %163 = vector.broadcast %161 : vector<1x256xf32> to vector<4x256xf32>
    %164 = arith.mulf %162, %163 : vector<4x256xf32>
    %165 = arith.addf %159, %164 : vector<4x256xf32>
    %166 = vector.extract_strided_slice %140 {offsets = [0, 4], sizes = [4, 1], strides = [1, 1]} : vector<4x8xf32> to vector<4x1xf32>
    %167 = vector.extract_strided_slice %139 {offsets = [4, 0], sizes = [1, 256], strides = [1, 1]} : vector<8x256xf32> to vector<1x256xf32>
    %168 = vector.broadcast %166 : vector<4x1xf32> to vector<4x256xf32>
    %169 = vector.broadcast %167 : vector<1x256xf32> to vector<4x256xf32>
    %170 = arith.mulf %168, %169 : vector<4x256xf32>
    %171 = arith.addf %165, %170 : vector<4x256xf32>
    %172 = vector.extract_strided_slice %140 {offsets = [0, 5], sizes = [4, 1], strides = [1, 1]} : vector<4x8xf32> to vector<4x1xf32>
    %173 = vector.extract_strided_slice %139 {offsets = [5, 0], sizes = [1, 256], strides = [1, 1]} : vector<8x256xf32> to vector<1x256xf32>
    %174 = vector.broadcast %172 : vector<4x1xf32> to vector<4x256xf32>
    %175 = vector.broadcast %173 : vector<1x256xf32> to vector<4x256xf32>
    %176 = arith.mulf %174, %175 : vector<4x256xf32>
    %177 = arith.addf %171, %176 : vector<4x256xf32>
    %178 = vector.extract_strided_slice %140 {offsets = [0, 6], sizes = [4, 1], strides = [1, 1]} : vector<4x8xf32> to vector<4x1xf32>
    %179 = vector.extract_strided_slice %139 {offsets = [6, 0], sizes = [1, 256], strides = [1, 1]} : vector<8x256xf32> to vector<1x256xf32>
    %180 = vector.broadcast %178 : vector<4x1xf32> to vector<4x256xf32>
    %181 = vector.broadcast %179 : vector<1x256xf32> to vector<4x256xf32>
    %182 = arith.mulf %180, %181 : vector<4x256xf32>
    %183 = arith.addf %177, %182 : vector<4x256xf32>
    %184 = vector.extract_strided_slice %140 {offsets = [0, 7], sizes = [4, 1], strides = [1, 1]} : vector<4x8xf32> to vector<4x1xf32>
    %185 = vector.extract_strided_slice %139 {offsets = [7, 0], sizes = [1, 256], strides = [1, 1]} : vector<8x256xf32> to vector<1x256xf32>
    %186 = vector.broadcast %184 : vector<4x1xf32> to vector<4x256xf32>
    %187 = vector.broadcast %185 : vector<1x256xf32> to vector<4x256xf32>
    %188 = arith.mulf %186, %187 : vector<4x256xf32>
    %189 = arith.addf %183, %188 : vector<4x256xf32>
    %c0_27 = arith.constant 0 : index
    %c0_28 = arith.constant 0 : index
    %190 = vector.load %arg7[%c0_27, %c0_28] : memref<4x1xf32, #tpu.memory_space<vmem>>, vector<4x1xf32>
    %191 = vector.broadcast %190 : vector<4x1xf32> to vector<4x256xf32>
    %192 = arith.addf %189, %191 : vector<4x256xf32>
    %193 = arith.addf %192, %1 : vector<4x256xf32>
    %c0_29 = arith.constant 0 : index
    %c0_30 = arith.constant 0 : index
    %c0_31 = arith.constant 0 : index
    %194 = vector.load %arg8[%c0_29, %c0_30, %c0_31] : memref<1x4x256xf32, #tpu.memory_space<vmem>>, vector<1x4x256xf32>
    %195 = vector.shape_cast %194 : vector<1x4x256xf32> to vector<4x256xf32>
    %196 = vector.shape_cast %193 : vector<4x256xf32> to vector<1x4x256xf32>
    tpu.vector_store %arg8[%c0_29, %c0_30, %c0_31], %196 {strides = array<i32>} : memref<1x4x256xf32, #tpu.memory_space<vmem>>, vector<1x4x256xf32>,
    return
  }
  func.func @transform_0(%arg0: i32) -> (i32, i32, i32) {
    %c0_i32 = arith.constant 0 : i32
    %c0_i32_0 = arith.constant 0 : i32
    %c0_i32_1 = arith.constant 0 : i32
    return %arg0, %c0_i32, %c0_i32_0 : i32, i32, i32
  }
  func.func @transform_1(%arg0: i32) -> (i32, i32) {
    %c0_i32 = arith.constant 0 : i32
    %c0_i32_0 = arith.constant 0 : i32
    %c0_i32_1 = arith.constant 0 : i32
    return %c0_i32, %c0_i32_0 : i32, i32
  }
  func.func @transform_2(%arg0: i32) -> (i32, i32) {
    %c0_i32 = arith.constant 0 : i32
    %c0_i32_0 = arith.constant 0 : i32
    %c0_i32_1 = arith.constant 0 : i32
    return %c0_i32, %c0_i32_0 : i32, i32
  }
  func.func @transform_3(%arg0: i32) -> (i32, i32) {
    %c0_i32 = arith.constant 0 : i32
    %c0_i32_0 = arith.constant 0 : i32
    %c0_i32_1 = arith.constant 0 : i32
    return %c0_i32, %c0_i32_0 : i32, i32
  }
  func.func @transform_4(%arg0: i32) -> (i32, i32) {
    %c0_i32 = arith.constant 0 : i32
    %c0_i32_0 = arith.constant 0 : i32
    %c0_i32_1 = arith.constant 0 : i32
    return %c0_i32, %c0_i32_0 : i32, i32
  }
  func.func @transform_5(%arg0: i32) -> (i32, i32) {
    %c0_i32 = arith.constant 0 : i32
    %c0_i32_0 = arith.constant 0 : i32
    %c0_i32_1 = arith.constant 0 : i32
    return %c0_i32, %c0_i32_0 : i32, i32
  }
  func.func @transform_6(%arg0: i32) -> (i32, i32) {
    %c0_i32 = arith.constant 0 : i32
    %c0_i32_0 = arith.constant 0 : i32
    %c0_i32_1 = arith.constant 0 : i32
    return %c0_i32, %c0_i32_0 : i32, i32
  }
  func.func @transform_7(%arg0: i32) -> (i32, i32, i32) {
    %c0_i32 = arith.constant 0 : i32
    %c0_i32_0 = arith.constant 0 : i32
    %c0_i32_1 = arith.constant 0 : i32
    return %arg0, %c0_i32, %c0_i32_0 : i32, i32, i32
  }
}

</mosaic_0001>

<bundles_post_ra>
// kernel: tpu_custom_call.1
= control target key start
LH: loop header
LB: loop body
LE: loop exit
PB: predicated region body
PF: predicated region fallthrough
CT: control target
= control target key end

     0   :  { %12 = vsyncpa [#allocation3], 0  ;;  %s1440_s0 = inlined_call_operand.vmem [shape: f32[2,4,256], index: 0, kind: input, shape index: {}]   ;;  %s1441_s1 = inlined_call_operand.vmem [shape: f32[8,4], index: 1, kind: input, shape index: {}]   ;;  %s1442_s2 = inlined_call_operand.vmem [shape: f32[8,1], index: 2, kind: input, shape index: {}]   ;;  %s1443_s3 = inlined_call_operand.vmem [shape: f32[8,9], index: 3, kind: input, shape index: {}]   ;;  %s1444_s4 = inlined_call_operand.vmem [shape: f32[8,1], index: 4, kind: input, shape index: {}]   ;;  %s1445_s5 = inlined_call_operand.vmem [shape: f32[4,8], index: 5, kind: input, shape index: {}]   ;;  %s1446_s6 = inlined_call_operand.vmem [shape: f32[4,1], index: 6, kind: input, shape index: {}]   ;;  %s1447_s7 = inlined_call_operand.hbm [shape: f32[2,4,256], index: 7, kind: output, shape index: {}]  }
   0x1   :  { %14 = vsyncpa [#allocation3 + $0x1], 0  ;;  %s1129_s24 = smov 0   ;;  %s1131_s25 = smov 0  }
   0x2   :  { %s1133_s26 = smov 0   ;;  %s1135_s27 = smov 0  }
   0x3 LB: > { %s1150_s28 = sadd.s32 4294967295, %s1068_s27   ;;  %s890_s29 = sadd.s32 4294967294, %s1068_s27   ;;  %s1068_s27 = sphi %s1135_s27, %s1461_s27   ;;  %s1064_s26 = sphi %s1133_s26, %s1460_s26   ;;  %s1060_s25 = sphi %s1131_s25, %s1459_s25   ;;  %s1056_s24 = sphi %s1129_s24, %s1458_s24  }
   0x4   : > { %s1154_s30 = sadd.s32 1, %s1068_s27   ;;  %s179_s8 = sadd.s32 1, %s1064_s26 }
   0x5   : > { %s176_s9 = ssub.s32 %s1068_s27, %s1154_s30  ;;  %p189_p0 = scmp.ne.s32.totalorder %s1064_s26, %s1060_s25 }
   0x6   : > { %p177_p1 = scmp.eq.s32.totalorder %s176_s9, 0  ;;  %p190_p2 = scmp.eq.s32.totalorder %s1150_s28, 1 }
   0x7   : > { %p195_p3 = scmp.ne.s32.totalorder %s1060_s25, %s1056_s24  ;;  %p196_p4 = scmp.eq.s32.totalorder %s890_s29, 1 }
   0x8   : > { %s1165_s10 = scalar_select %p177_p1, %s1064_s26, %s179_s8  }
   0x9   : > { %p1167_p5 = por %p190_p2, %p189_p0  ;;  %p1171_p6 = por %p196_p4, %p195_p3 }
   0xa   : > { %p893_p7 = scmp.ge.s32.totalorder %s1068_s27, 1  ;;  %p240_p8 = scmp.lt.s32.totalorder %s1068_s27, 3 }
   0xc   : > { %p241_p9 = pnand %p893_p7, %p240_p8 }
   0xd   : > { %v278_v0 = vld [vmem:[%s1441_s1] sm:$0xff] (!%p241_p9)  ;;  %v1070_v1 = vmov (!%p241_p9), 0   ;;  %v1071_v2 = vmov (!%p241_p9), 2   ;;  %v1072_v3 = vmov (!%p241_p9), 1   ;;  %v1073_v4 = vmov (!%p241_p9), 3   ;;  %p272_p10 = scmp.lt.s32.totalorder (!%p241_p9), %s1150_s28, 1 }
   0xe   : > { %244 = sbr.rel (%p241_p9) target bundleno = 542 (0x21e), region = 48  ;;  %965 = vset.pattern.permute.xlu0 (!%p241_p9), %v1070_v1  ;;  %967 = vset.pattern.permute.xlu1 (!%p241_p9), %v1071_v2  ;;  %v1187_v5 = vld [vmem:[%s1443_s3] sm:$0xff] (!%p241_p9)  ;;  %v1074_v7 = vmov (!%p241_p9), 4   ;;  %v1075_v8 = vmov (!%p241_p9), 7   ;;  %v285_v9 = vlaneseq (!%p241_p9)  ;;  %s1076_s29 = smov (!%p241_p9), 17   ;;  %vm413_vm0 = vcmask (!%p241_p9), 138240  }
   0xf   : > { %281 = vperm.xlu0 (!%p241_p9), %965, %v278_v0   ;;  %334 = vperm.xlu1 (!%p241_p9), %967, %v278_v0   ;;  %v385_v6 = vld [vmem:[%s1442_s2] sm:$0xff] (!%p241_p9)  ;;  %s1080_s13 = smov (!%p241_p9), 126   ;;  %s1081_s14 = smov (!%p241_p9), 112   ;;  %vm502_vm1 = vcmask (!%p241_p9), 1031168   ;;  %vm523_vm4 = vcmask (!%p241_p9), 916480   ;;  %vm483_vm5 = vcmask (!%p241_p9), 1039360  }
  0x10   : > { %v286_v10 = vshrl.u32 (!%p241_p9), %v285_v9, 7  ;;  %s1082_s15 = smov (!%p241_p9), 110   ;;  %s1083_s16 = smov (!%p241_p9), 96   ;;  %vm567_vm8 = vcmask (!%p241_p9), 900096   ;;  %vm588_vm9 = vcmask (!%p241_p9), 785408   ;;  %vm554_vm10 = vcmask (!%p241_p9), 908288  }
  0x11   : > { %s1084_s17 = smov (!%p241_p9), 94   ;;  %s1085_s18 = smov (!%p241_p9), 127   ;;  %vm632_vm11 = vcmask (!%p241_p9), 769024   ;;  %vm619_vm12 = vcmask (!%p241_p9), 777216  }
  0x12   : > { %v1202_v11 = vsub.s32 (!%p241_p9), 0, %v286_v10  ;;  %v1204_v12 = vsub.s32 (!%p241_p9), 4, %v286_v10  ;;  %v1206_v13 = vsub.s32 (!%p241_p9), 1, %v286_v10  ;;  %v1208_v14 = vsub.s32 (!%p241_p9), 5, %v286_v10  ;;  %s269_s8 = sand.u32 (!%p241_p9), 1, %s1060_s25  }
  0x13   : > { %966 = vset.pattern.permute.xlu0 (!%p241_p9), %v1072_v3  ;;  %968 = vset.pattern.permute.xlu1 (!%p241_p9), %v1073_v4  ;;  %v1212_v16 = vsub.s32 (!%p241_p9), 2, %v286_v10  ;;  %v1214_v17 = vsub.s32 (!%p241_p9), 6, %v286_v10  ;;  %v1216_v18 = vsub.s32 (!%p241_p9), 3, %v286_v10  ;;  %v1218_v19 = vsub.s32 (!%p241_p9), 7, %v286_v10  ;;  %s894_s9 = sshll.u32 (!%p241_p9), %s269_s8, 3 }
  0x14   : > { %308 = vperm.xlu0 (!%p241_p9), %966, %v278_v0   ;;  %360 = vperm.xlu1 (!%p241_p9), %968, %v278_v0  }
  0x15   : > { %s273_s19 = scalar_select %p272_p10, %s1150_s28, 1 }
  0x17   : > { %s906_s20 = sshll.u32 %s273_s19, 3  ;;  %s1086_s19 = smov 111  }
  0x18   : > { %468 = vperm.xlu0 %966, %v1187_v5   ;;  %969 = vset.pattern.permute.xlu1 %v1070_v1  ;;  %s276_s23 = scalar_lea.vmem %s1440_s0, %s906_s20  ;;  %s1087_s20 = smov 95  }
  0x19   : > { %388 = vperm.xlu1 %969, %v385_v6   ;;  %v1210_v15 = vld [vmem:[%s276_s23] sm:$0xff] }
  0x1a   : > { %v288_v20 = vrot.slane %v1210_v15, %v1202_v11  ;;  %v292_v21 = vrot.slane %v1210_v15, %v1204_v12  ;;  %v314_v22 = vrot.slane %v1210_v15, %v1206_v13  ;;  %v318_v23 = vrot.slane %v1210_v15, %v1208_v14 }
  0x1b   : > { %v340_v24 = vrot.slane %v1210_v15, %v1212_v16  ;;  %v344_v25 = vrot.slane %v1210_v15, %v1214_v17  ;;  %v366_v28 = vrot.slane %v1210_v15, %v1216_v18  ;;  %v370_v29 = vrot.slane %v1210_v15, %v1218_v19 }
  0x1c   : > { %971 = vset.pattern.permute.xlu0 %v1075_v8  ;;  %v298_v30 = vrot.slane %v288_v20, %v1202_v11  ;;  %v302_v31 = vrot.slane %v292_v21, %v1202_v11  ;;  %v324_v32 = vrot.slane %v314_v22, %v1206_v13  ;;  %v328_v33 = vrot.slane %v318_v23, %v1206_v13  ;;  %v647_v23 = vld [vmem:[%s1444_s4] sm:$0xff] }
  0x1d   : > { %970 = vset.pattern.permute.xlu1 %v1074_v7  ;;  %v350_v34 = vrot.slane %v340_v24, %v1212_v16  ;;  %v354_v35 = vrot.slane %v344_v25, %v1212_v16  ;;  %v376_v36 = vrot.slane %v366_v28, %v1216_v18  ;;  %v380_v37 = vrot.slane %v370_v29, %v1216_v18 }
  0x1e   : > { %v1077_v20 = vmov 5   ;;  %v1078_v21 = vmov 6   ;;  %v1079_v22 = vmov 8  }
  0x8e   : > { %v282_v26 = vpop.permute.xlu0 %281  ;;  %v335_v27 = vpop.permute.xlu1 %334 }
  0x8f   : > { %v303_v40 = vmul.f32 %v298_v30, %v282_v26  ;;  %v304_v41 = vmul.f32 %v302_v31, %v282_v26  ;;  %v355_v44 = vmul.f32 %v350_v34, %v335_v27  ;;  %v356_v45 = vmul.f32 %v354_v35, %v335_v27 }
  0x93   : > { %v309_v38 = vpop.permute.xlu0 %308  ;;  %v361_v39 = vpop.permute.xlu1 %360 }
  0x94   : > { %v329_v42 = vmul.f32 %v324_v32, %v309_v38  ;;  %v330_v43 = vmul.f32 %v328_v33, %v309_v38  ;;  %v381_v48 = vmul.f32 %v376_v36, %v361_v39  ;;  %v382_v49 = vmul.f32 %v380_v37, %v361_v39  ;;  %v669_v36 = vld [vmem:[%s1445_s5] sm:$0xf] }
  0x96   : > { %v331_v46 = vadd.f32 %v329_v42, %v303_v40  ;;  %v332_v47 = vadd.f32 %v330_v43, %v304_v41 }
  0x97   : > { %v469_v24 = vpop.permute.xlu0 %468 }
  0x98   : > { %v357_v50 = vadd.f32 %v355_v44, %v331_v46  ;;  %v358_v51 = vadd.f32 %v356_v45, %v332_v47  ;;  %v389_v52 = vpop.permute.xlu1 %388 }
  0x9a   : > { %v383_v53 = vadd.f32 %v381_v48, %v357_v50  ;;  %v384_v54 = vadd.f32 %v382_v49, %v358_v51 }
  0x9c   : > { %v391_v55 = vadd.f32 %v389_v52, %v383_v53  ;;  %v392_v56 = vadd.f32 %v389_v52, %v384_v54  ;;  %v421_v53 = vand.u32 127, %v285_v9 }
  0x9e   : > { %v897_v57 = vmul.f32 -1.442695, %v391_v55  ;;  %v898_v58 = vmul.f32 -1.442695, %v392_v56 }
  0xa0   : > { %990 = vpow2.f32 %v897_v57 }
  0xa1   : > { %992 = vpow2.f32 %v898_v58 }
  0xaa   : > { %v991_v59 = vpop.eup %990 }
  0xab   : > { %v993_v60 = vpop.eup %992  ;;  %v399_v61 = vadd.f32 1.0, %v991_v59 }
  0xac   : > { %v400_v62 = vadd.f32 1.0, %v993_v60 }
  0xad   : > { %994 = vrcp.f32 %v399_v61 }
  0xae   : > { %996 = vrcp.f32 %v400_v62 }
  0xb7   : > { %v995_v63 = vpop.eup %994 }
  0xb8   : > { %v997_v0 = vpop.eup %996  ;;  %v405_v6 = vmul.f32 %v995_v63, %v391_v55  ;;  %v422_v55 = vadd.s32 128, %v421_v53 }
  0xb9   : > { %v406_v10 = vmul.f32 %v997_v0, %v392_v56  ;;  %v427_v56 = vand.u32 15, %v421_v53 }
  0xba   : > { %409 = vrot.lane.b32.xlu1 %v405_v6, %s1076_s29  ;;  %v434_v59 = vand.u32 15, %v422_v55 }
  0xbb   : > { %411 = vrot.lane.b32.xlu0 %v406_v10, %s1076_s29  ;;  %vm1308_vm2 = vcmp.ge.s32.totalorder %v427_v56, 1  ;;  %vm1312_vm3 = vcmp.le.s32.totalorder %v427_v56, 14 }
  0xbc   : > { %vm1316_vm6 = vcmp.ge.s32.totalorder %v434_v59, 1  ;;  %vm1325_vm7 = vcmp.le.s32.totalorder %v434_v59, 14 }
  0xbe   : > { %539 = vperm.xlu1 %970, %v1187_v5  }
  0xbf   : > { %604 = vperm.xlu0 %971, %v1187_v5  }
  0xc2   : > { %972 = vset.pattern.permute.xlu1 %v1070_v1 }
  0xc3   : > { %460 = vperm.xlu1 %972, %v1187_v5   ;;  %974 = vset.pattern.permute.xlu0 %v1073_v4 }
  0xc4   : > { %531 = vperm.xlu0 %974, %v1187_v5  }
  0xc7   : > { %973 = vset.pattern.permute.xlu1 %v1071_v2 }
  0xc8   : > { %510 = vperm.xlu1 %973, %v1187_v5   ;;  %975 = vset.pattern.permute.xlu0 %v1077_v20 }
  0xc9   : > { %575 = vperm.xlu0 %975, %v1187_v5  }
  0xcc   : > { %976 = vset.pattern.permute.xlu1 %v1078_v21 }
  0xcd   : > { %596 = vperm.xlu1 %976, %v1187_v5   ;;  %977 = vset.pattern.permute.xlu0 %v1079_v22 }
  0xce   : > { %640 = vperm.xlu0 %977, %v1187_v5  }
  0xd1   : > { %978 = vset.pattern.permute.xlu1 %v1070_v1 }
  0xd2   : > { %650 = vperm.xlu1 %978, %v647_v23   ;;  %979 = vset.pattern.permute.xlu0 %v1070_v1 }
  0xd6   : > { %980 = vset.pattern.permute.xlu1 %v1072_v3 }
 0x12c   : > { %v410_v25 = vpop.permute.xlu1 %409 }
 0x12d   : > { %v412_v26 = vpop.permute.xlu0 %411  ;;  %v1263_v27 = vsel %vm413_vm0, 0.0, %v410_v25 }
 0x12e   : > { %v419_v28 = vsel %vm413_vm0, %v412_v26, 0.0  ;;  %496 = vrot.lane.b32.xlu1 %v1263_v27, %s1080_s13  ;;  %v1266_v5 = vsel %vm413_vm0, %v410_v25, %v412_v26  ;;  %v471_v31 = vmul.f32 %v469_v24, %v1263_v27  ;;  %v456_v6 = vsel %vm1308_vm2, %v1263_v27, 0.0 }
 0x12f   : > { %500 = vrot.lane.b32.xlu0 %v419_v28, %s1080_s13  ;;  %v472_v3 = vmul.f32 %v469_v24, %v1266_v5  ;;  %v473_v33 = vmul.f32 %v469_v24, %v419_v28 }
 0x132   : > { %498 = vrot.lane.b32.xlu1 %v1266_v5, %s1080_s13  ;;  %s907_s13 = sshll.u32 %s1150_s28, 7  ;;  %s1088_s28 = smov [#allocation2]  }
 0x133   : > { %521 = vrot.lane.b32.xlu0 %v419_v28, %s1081_s14  ;;  %s1010_s21 = sshll.u32 %s1088_s28, 4  ;;  %s1011_s21 = int_to_ptr.vmem [resolvable:$false] %s1010_s21 }
 0x134   : > { %s1012_s22 = scalar_lea.vmem %s1011_s21, 256 }
 0x136   : > { %517 = vrot.lane.b32.xlu1 %v1263_v27, %s1081_s14 }
 0x137   : > { %561 = vrot.lane.b32.xlu0 %v1263_v27, %s1082_s15 }
 0x13a   : > { %519 = vrot.lane.b32.xlu1 %v1266_v5, %s1081_s14  ;;  %s271_s14 = scalar_lea.vmem [#allocation2], %s894_s9 }
 0x13b   : > { %565 = vrot.lane.b32.xlu0 %v419_v28, %s1082_s15 }
 0x13d   : > { %v540_v29 = vpop.permute.xlu1 %539 }
 0x13e   : > { %563 = vrot.lane.b32.xlu1 %v1266_v5, %s1082_s15  ;;  %v543_v30 = vmul.f32 %v540_v29, %v1266_v5  ;;  %v605_v32 = vpop.permute.xlu0 %604  ;;  %v542_v35 = vmul.f32 %v540_v29, %v1263_v27  ;;  %v544_v37 = vmul.f32 %v540_v29, %v419_v28  ;;  %s831_s15 = sshll.u32 %s271_s14, 4  ;;  %s1400_s15 = int_to_ptr.vmem [resolvable:$true] %s831_s15 }
 0x13f   : > { %586 = vrot.lane.b32.xlu0 %v419_v28, %s1083_s16  ;;  %v608_v34 = vmul.f32 %v605_v32, %v1266_v5  ;;  %v607_v38 = vmul.f32 %v605_v32, %v1263_v27  ;;  %v609_v39 = vmul.f32 %v605_v32, %v419_v28  ;;  %p1013_p0 = scmp.lt.s32.totalorder %s1400_s15, %s1011_s21 }
 0x142   : > { %582 = vrot.lane.b32.xlu1 %v1263_v27, %s1083_s16  ;;  %v461_v40 = vpop.permute.xlu1 %460 }
 0x143   : > { %626 = vrot.lane.b32.xlu0 %v1263_v27, %s1084_s17  ;;  %v457_v27 = vsel %vm1316_vm6, %v1266_v5, 0.0 }
 0x146   : > { %584 = vrot.lane.b32.xlu1 %v1266_v5, %s1083_s16 }
 0x147   : > { %479 = vrot.lane.b32.xlu0 %v472_v3, %s1085_s18  ;;  %v511_v41 = vpop.permute.xlu1 %510 }
 0x14a   : > { %628 = vrot.lane.b32.xlu1 %v1266_v5, %s1084_s17 }
 0x14b   : > { %550 = vrot.lane.b32.xlu0 %v543_v30, %s1086_s19  ;;  %v464_v30 = vmul.f32 %v461_v40, %v457_v27 }
 0x14c   : > { %v1299_v42 = vpop.permute.xlu1 %596 }
 0x14e   : > { %477 = vrot.lane.b32.xlu1 %v471_v31, %s1085_s18 }
 0x14f   : > { %630 = vrot.lane.b32.xlu0 %v419_v28, %s1084_s17 }
 0x151   : > { %v1303_v43 = vpop.permute.xlu1 %650 }
 0x152   : > { %481 = vrot.lane.b32.xlu1 %v473_v33, %s1085_s18  ;;  %s1398_s18 = scalar_lea.hbm %s1447_s7, %s907_s13 }
 0x153   : > { %615 = vrot.lane.b32.xlu0 %v608_v34, %s1087_s20 }
 0x156   : > { %548 = vrot.lane.b32.xlu1 %v542_v35, %s1086_s19 }
 0x157   : > { %672 = vperm.xlu0 %979, %v669_v36  }
 0x15a   : > { %552 = vrot.lane.b32.xlu1 %v544_v37, %s1086_s19  ;;  %s817_s19 = scalar_lea.sflag [#allocation3], %s269_s8 }
 0x15b   : > { %982 = vset.pattern.permute.xlu0 %v1073_v4  ;;  %v799_v4 = vld [vmem:[%s1446_s6] sm:$0xf] }
 0x15c   : > { %720 = vperm.xlu0 %982, %v669_v36  }
 0x15e   : > { %613 = vrot.lane.b32.xlu1 %v607_v38, %s1087_s20 }
 0x160   : > { %985 = vset.pattern.permute.xlu0 %v1078_v21 }
 0x161   : > { %768 = vperm.xlu0 %985, %v669_v36  }
 0x162   : > { %617 = vrot.lane.b32.xlu1 %v609_v39, %s1087_s20  ;;  %s1006_s20 = scalar_lea.vmem %s1400_s15, 128 }
 0x163   : > { %p1007_p11 = scmp.ne.s32.totalorder %s1400_s15, %s1006_s20  ;;  %p1014_p1 = scmp.lt.s32.totalorder %s1012_s22, %s1006_s20 }
 0x165   : > { %988 = vset.pattern.permute.xlu0 %v1070_v1  ;;  %p1008_p12 = pnand %p1007_p11, %p1167_p5  ;;  %p1015_p2 = por %p1014_p1, %p1013_p0 }
 0x166   : > { %688 = vperm.xlu1 %980, %v669_v36  }
 0x167   : > { %p1009_p13 = pneg %p1008_p12 }
 0x169   : > { %p1016_p3 = pnand %p1015_p2, %p1009_p13 }
 0x16a   : > { %981 = vset.pattern.permute.xlu1 %v1071_v2  ;;  %v1297_v2 = vpop.permute.xlu0 %531 }
 0x16b   : > { %704 = vperm.xlu1 %981, %v669_v36  }
 0x16f   : > { %983 = vset.pattern.permute.xlu1 %v1074_v7  ;;  %v1301_v7 = vpop.permute.xlu0 %575 }
 0x170   : > { %736 = vperm.xlu1 %983, %v669_v36  }
 0x173   : > { %v1305_v44 = vpop.permute.xlu0 %640 }
 0x174   : > { %984 = vset.pattern.permute.xlu1 %v1077_v20  ;;  %v463_v20 = vmul.f32 %v461_v40, %v456_v6 }
 0x175   : > { %752 = vperm.xlu1 %984, %v669_v36  }
 0x179   : > { %986 = vset.pattern.permute.xlu1 %v1075_v8 }
 0x17a   : > { %784 = vperm.xlu1 %986, %v669_v36  }
 0x17e   : > { %987 = vset.pattern.permute.xlu1 %v1070_v1 }
 0x17f   : > { %802 = vperm.xlu1 %987, %v799_v4  }
 0x1a0   : > { %v497_v8 = vpop.permute.xlu1 %496 }
 0x1a1   : > { %v501_v45 = vpop.permute.xlu0 %500 }
 0x1a4   : > { %v499_v46 = vpop.permute.xlu1 %498 }
 0x1a5   : > { %v522_v47 = vpop.permute.xlu0 %521  ;;  %v503_v62 = vsel %vm502_vm1, %v497_v8, %v499_v46  ;;  %v504_v22 = vsel %vm502_vm1, %v499_v46, %v501_v45 }
 0x1a6   : > { %v507_v10 = vsel %vm1312_vm3, %v503_v62, 0.0  ;;  %v508_v3 = vsel %vm1325_vm7, %v504_v22, 0.0 }
 0x1a7   : > { %v513_v26 = vmul.f32 %v511_v41, %v507_v10  ;;  %v514_v37 = vmul.f32 %v511_v41, %v508_v3 }
 0x1a8   : > { %v518_v48 = vpop.permute.xlu1 %517 }
 0x1a9   : > { %v562_v49 = vpop.permute.xlu0 %561 }
 0x1ac   : > { %v520_v1 = vpop.permute.xlu1 %519 }
 0x1ad   : > { %v566_v50 = vpop.permute.xlu0 %565  ;;  %v524_v23 = vsel %vm523_vm4, %v518_v48, %v520_v1  ;;  %v525_v31 = vsel %vm523_vm4, %v520_v1, %v522_v47 }
 0x1ae   : > { %v528_v29 = vsel %vm1308_vm2, %v524_v23, 0.0  ;;  %v529_v39 = vsel %vm1316_vm6, %v525_v31, 0.0 }
 0x1af   : > { %v534_v5 = vmul.f32 %v1297_v2, %v528_v29  ;;  %v535_v48 = vmul.f32 %v1297_v2, %v529_v39 }
 0x1b0   : > { %v564_v51 = vpop.permute.xlu1 %563 }
 0x1b1   : > { %v587_v52 = vpop.permute.xlu0 %586  ;;  %v568_v32 = vsel %vm567_vm8, %v562_v49, %v564_v51  ;;  %v569_v40 = vsel %vm567_vm8, %v564_v51, %v566_v50 }
 0x1b2   : > { %v572_v4 = vsel %vm1312_vm3, %v568_v32, 0.0  ;;  %v573_v55 = vsel %vm1325_vm7, %v569_v40, 0.0 }
 0x1b3   : > { %v578_v49 = vmul.f32 %v1301_v7, %v572_v4  ;;  %v579_v2 = vmul.f32 %v1301_v7, %v573_v55 }
 0x1b4   : > { %v583_v54 = vpop.permute.xlu1 %582 }
 0x1b5   : > { %v627_v57 = vpop.permute.xlu0 %626 }
 0x1b8   : > { %v585_v58 = vpop.permute.xlu1 %584 }
 0x1b9   : > { %v480_v0 = vpop.permute.xlu0 %479  ;;  %v589_v8 = vsel %vm588_vm9, %v583_v54, %v585_v58  ;;  %v590_v51 = vsel %vm588_vm9, %v585_v58, %v587_v52 }
 0x1ba   : > { %v593_v50 = vsel %vm1308_vm2, %v589_v8, 0.0 }
 0x1bb   : > { %v599_v6 = vmul.f32 %v1299_v42, %v593_v50 }
 0x1bc   : > { %v629_v63 = vpop.permute.xlu1 %628 }
 0x1bd   : > { %v551_v33 = vpop.permute.xlu0 %550  ;;  %v633_v54 = vsel %vm632_vm11, %v627_v57, %v629_v63 }
 0x1be   : > { %v637_v60 = vsel %vm1312_vm3, %v633_v54, 0.0 }
 0x1c0   : > { %v478_v24 = vpop.permute.xlu1 %477 }
 0x1c1   : > { %v484_v25 = vsel %vm483_vm5, %v478_v24, %v480_v0  ;;  %v631_v1 = vpop.permute.xlu0 %630 }
 0x1c2   : > { %v488_v28 = vadd.f32 %v484_v25, %v463_v20  ;;  %v594_v20 = vsel %vm1316_vm6, %v590_v51, 0.0  ;;  %v634_v52 = vsel %vm632_vm11, %v629_v63, %v631_v1  ;;  %v643_v25 = vmul.f32 %v1305_v44, %v637_v60 }
 0x1c3   : > { %v600_v7 = vmul.f32 %v1299_v42, %v594_v20  ;;  %v638_v9 = vsel %vm1325_vm7, %v634_v52, 0.0 }
 0x1c4   : > { %v515_v34 = vadd.f32 %v513_v26, %v488_v28  ;;  %v482_v35 = vpop.permute.xlu1 %481  ;;  %v644_v63 = vmul.f32 %v1305_v44, %v638_v9 }
 0x1c5   : > { %v485_v36 = vsel %vm483_vm5, %v480_v0, %v482_v35  ;;  %v616_v57 = vpop.permute.xlu0 %615 }
 0x1c6   : > { %v489_v38 = vadd.f32 %v485_v36, %v464_v30  ;;  %v536_v46 = vadd.f32 %v534_v5, %v515_v34 }
 0x1c8   : > { %v516_v45 = vadd.f32 %v514_v37, %v489_v38  ;;  %v549_v47 = vpop.permute.xlu1 %548 }
 0x1c9   : > { %v555_v41 = vsel %vm554_vm10, %v549_v47, %v551_v33 }
 0x1ca   : > { %v559_v53 = vadd.f32 %v555_v41, %v536_v46  ;;  %v537_v59 = vadd.f32 %v535_v48, %v516_v45 }
 0x1cc   : > { %v580_v56 = vadd.f32 %v578_v49, %v559_v53  ;;  %v553_v62 = vpop.permute.xlu1 %552 }
 0x1cd   : > { %v556_v0 = vsel %vm554_vm10, %v551_v33, %v553_v62 }
 0x1ce   : > { %v560_v10 = vadd.f32 %v556_v0, %v537_v59  ;;  %v601_v22 = vadd.f32 %v599_v6, %v580_v56 }
 0x1d0   : > { %v581_v58 = vadd.f32 %v579_v2, %v560_v10  ;;  %v614_v23 = vpop.permute.xlu1 %613 }
 0x1d1   : > { %v620_v24 = vsel %vm619_vm12, %v614_v23, %v616_v57 }
 0x1d2   : > { %v624_v26 = vadd.f32 %v620_v24, %v601_v22  ;;  %v602_v27 = vadd.f32 %v600_v7, %v581_v58 }
 0x1d4   : > { %v645_v28 = vadd.f32 %v643_v25, %v624_v26  ;;  %v618_v61 = vpop.permute.xlu1 %617 }
 0x1d5   : > { %v621_v3 = vsel %vm619_vm12, %v616_v57, %v618_v61 }
 0x1d6   : > { %v653_v29 = vadd.f32 %v1303_v43, %v645_v28  ;;  %v625_v30 = vadd.f32 %v621_v3, %v602_v27  ;;  %v673_v38 = vpop.permute.xlu0 %672 }
 0x1d8   : > { %v899_v31 = vmul.f32 -1.442695, %v653_v29  ;;  %v646_v32 = vadd.f32 %v644_v63, %v625_v30 }
 0x1da   : > { %998 = vpow2.f32 %v899_v31  ;;  %v654_v42 = vadd.f32 %v1303_v43, %v646_v32 }
 0x1db   : > { %v721_v49 = vpop.permute.xlu0 %720 }
 0x1dc   : > { %v900_v33 = vmul.f32 -1.442695, %v654_v42 }
 0x1de   : > { %1000 = vpow2.f32 %v900_v33 }
 0x1e0   : > { %v769_v58 = vpop.permute.xlu0 %768 }
 0x1e4   : > { %v999_v34 = vpop.eup %998 }
 0x1e5   : > { %v661_v21 = vadd.f32 1.0, %v999_v34  ;;  %v689_v35 = vpop.permute.xlu1 %688 }
 0x1e7   : > { %1002 = vrcp.f32 %v661_v21 }
 0x1e8   : > { %v1001_v36 = vpop.eup %1000 }
 0x1e9   : > { %v662_v37 = vadd.f32 1.0, %v1001_v36 }
 0x1ea   : > { %v705_v5 = vpop.permute.xlu1 %704 }
 0x1eb   : > { %1004 = vrcp.f32 %v662_v37 }
 0x1ef   : > { %v737_v4 = vpop.permute.xlu1 %736 }
 0x1f1   : > { %v1003_v44 = vpop.eup %1002 }
 0x1f2   : > { %v667_v39 = vmul.f32 %v1003_v44, %v653_v29 }
 0x1f4   : > { %v694_v40 = vrot.slane %v667_v39, %v1206_v13  ;;  %v678_v8 = vrot.slane %v667_v39, %v1202_v11  ;;  %v710_v43 = vrot.slane %v667_v39, %v1212_v16  ;;  %v726_v46 = vrot.slane %v667_v39, %v1216_v18  ;;  %v753_v62 = vpop.permute.xlu1 %752 }
 0x1f5   : > { %v1005_v45 = vpop.eup %1004  ;;  %v742_v53 = vrot.slane %v667_v39, %v1204_v12  ;;  %v758_v59 = vrot.slane %v667_v39, %v1208_v14  ;;  %v774_v60 = vrot.slane %v667_v39, %v1214_v17  ;;  %v790_v26 = vrot.slane %v667_v39, %v1218_v19 }
 0x1f6   : > { %v668_v47 = vmul.f32 %v1005_v45, %v654_v42  ;;  %v699_v41 = vmul.f32 %v694_v40, %v689_v35  ;;  %v683_v48 = vmul.f32 %v678_v8, %v673_v38  ;;  %v715_v1 = vmul.f32 %v710_v43, %v705_v5 }
 0x1f7   : > { %v731_v56 = vmul.f32 %v726_v46, %v721_v49  ;;  %v747_v20 = vmul.f32 %v742_v53, %v737_v4  ;;  %v763_v7 = vmul.f32 %v758_v59, %v753_v62  ;;  %v779_v25 = vmul.f32 %v774_v60, %v769_v58 }
 0x1f8   : > { %v698_v55 = vrot.slane %v668_v47, %v1206_v13  ;;  %v682_v50 = vrot.slane %v668_v47, %v1202_v11  ;;  %v701_v51 = vadd.f32 %v699_v41, %v683_v48  ;;  %v714_v54 = vrot.slane %v668_v47, %v1212_v16 }
 0x1f9   : > { %v730_v10 = vrot.slane %v668_v47, %v1216_v18  ;;  %v746_v11 = vrot.slane %v668_v47, %v1204_v12  ;;  %v762_v16 = vrot.slane %v668_v47, %v1208_v14  ;;  %v785_v18 = vpop.permute.xlu1 %784  ;;  %v778_v27 = vrot.slane %v668_v47, %v1214_v17 }
 0x1fa   : > { %v700_v0 = vmul.f32 %v698_v55, %v689_v35  ;;  %v684_v2 = vmul.f32 %v682_v50, %v673_v38  ;;  %v717_v6 = vadd.f32 %v715_v1, %v701_v51  ;;  %v716_v57 = vmul.f32 %v714_v54, %v705_v5 }
 0x1fb   : > { %v732_v23 = vmul.f32 %v730_v10, %v721_v49  ;;  %v748_v28 = vmul.f32 %v746_v11, %v737_v4  ;;  %v764_v3 = vmul.f32 %v762_v16, %v753_v62  ;;  %v794_v12 = vrot.slane %v668_v47, %v1218_v19 }
 0x1fc   : > { %v702_v52 = vadd.f32 %v700_v0, %v684_v2  ;;  %v733_v13 = vadd.f32 %v731_v56, %v717_v6  ;;  %v795_v14 = vmul.f32 %v790_v26, %v785_v18  ;;  %v780_v30 = vmul.f32 %v778_v27, %v769_v58 }
 0x1fd   : > { %v796_v33 = vmul.f32 %v794_v12, %v785_v18  ;;  %v807_v17 = vcombine.high %v1210_v15, %v1210_v15 }
 0x1fe   : > { %v718_v22 = vadd.f32 %v716_v57, %v702_v52  ;;  %v749_v24 = vadd.f32 %v747_v20, %v733_v13  ;;  %v803_v42 = vpop.permute.xlu1 %802 }
 0x200   : > { %v734_v9 = vadd.f32 %v732_v23, %v718_v22  ;;  %v765_v61 = vadd.f32 %v763_v7, %v749_v24 }
 0x202   : > { %v750_v63 = vadd.f32 %v748_v28, %v734_v9  ;;  %v781_v29 = vadd.f32 %v779_v25, %v765_v61 }
 0x204   : > { %v766_v31 = vadd.f32 %v764_v3, %v750_v63  ;;  %v797_v32 = vadd.f32 %v795_v14, %v781_v29 }
 0x206   : > { %v782_v34 = vadd.f32 %v780_v30, %v766_v31  ;;  %v805_v35 = vadd.f32 %v803_v42, %v797_v32 }
 0x208   : > { %v798_v21 = vadd.f32 %v796_v33, %v782_v34  ;;  %v809_v19 = vadd.f32 %v805_v35, %v1210_v15 }
 0x20a   : > { %v806_v36 = vadd.f32 %v803_v42, %v798_v21 }
 0x20c   : > { %v810_v37 = vadd.f32 %v807_v17, %v806_v36 }
 0x20e   : > { %v813_v5 = vcombine.low %v809_v19, %v810_v37 }
 0x210   : > { %815 = vst [vmem:[%s271_s14] sm:$0xff] %v813_v5 }
 0x211   : > { %1019 = shalt.err (!%p1016_p3)
}
 0x212   : > { %s1020_s23 = scalar_lea.hbm %s1398_s18, 128  ;;  %s1024_s9 = scalar_lea.hbm %s1447_s7, 256 }
 0x213   : > { %p1021_p4 = scmp.ne.s32.totalorder %s1398_s18, %s1020_s23  ;;  %p1025_p9 = scmp.lt.u32.totalorder %s1398_s18, %s1447_s7 }
 0x214   : > { %p1026_p10 = scmp.lt.u32.totalorder %s1024_s9, %s1020_s23  ;;  %p1028_p12 = scmp.lt.u32.totalorder %s1020_s23, %s1398_s18 }
 0x215   : > { %p1022_p7 = pnand %p1021_p4, %p1167_p5 }
 0x216   : > { %p1027_p11 = por %p1026_p10, %p1025_p9 }
 0x217   : > { %p1023_p8 = pneg %p1022_p7 }
 0x218   : > { %p1029_p13 = por %p1028_p12, %p1027_p11 }
 0x21a   : > { %p1030_p0 = pnand %p1029_p13, %p1023_p8 }
 0x21c   : > { %1033 = shalt.err (!%p1030_p0)
}
 0x21d   : > { %908 = dma.vmem_to_hbm [thread:$0]  (%p1167_p5), %s1400_s15, 128, %s1398_s18, %s817_s19  }
 0x21e PF: > { %p914_p1 = scmp.ge.s32.totalorder %s1068_s27, 2  ;;  %s843_s16 = sand.u32 1, %s1056_s24  }
 0x21f   : > { %s844_s17 = scalar_lea.sflag [#allocation3], %s843_s16 }
 0x220   : > { %p911_p2 = pnand %p914_p1, %p1171_p6 }
 0x222   : > { %1051 = dma.done.wait (!%p911_p2), %s844_s17, 128  }
 0x223   : > { %1053 = vsyncadd (!%p911_p2), %s844_s17, 4294967168  ;;  %p17_p3 = scmp.ge.s32.totalorder %s1154_s30, 4   ;;  %s1458_s24 = smov %s1060_s25 }
 0x224   : > { %s1459_s25 = smov %s1064_s26  ;;  %s1460_s26 = smov %s1165_s10 }
 0x225   : > { %s1461_s27 = smov %s1154_s30  ;;  %19 = sbr.rel (!%p17_p3) target bundleno = 3 (0x3), region = 83 }
 0x22c   :  { %849 = vsyncpa [#allocation3], 1 }
 0x22d   :  { %851 = vsyncpa [#allocation3 + $0x1], 1 }

</bundles_post_ra>
